<compile_context>
chip_gen: v5e
topology: v5e:2x2
jax: 0.10.0
libtpu: 0.0.40
codegen_flags: <defaults>
</compile_context>

<pallas_src>
import jax
import jax.numpy as jnp
from jax.experimental import pallas as pl
from jax.experimental.pallas import tpu as pltpu


def _round_up(n, m):
    return ((n + m - 1) // m) * m


def qnet_kernel(x_ref, w1_ref, b1_ref, w2_ref, b2_ref, w3_ref, b3_ref, o_ref):
    # layer 1: bf16 matmul inputs, f32 accumulate -> bias + ReLU in f32
    h1 = jnp.dot(x_ref[...], w1_ref[...], preferred_element_type=jnp.float32)
    h1 = jnp.maximum(h1 + b1_ref[...], 0.0)
    # layer 2
    h2 = jnp.dot(h1.astype(jnp.bfloat16), w2_ref[...],
                 preferred_element_type=jnp.float32)
    h2 = jnp.maximum(h2 + b2_ref[...], 0.0)
    # layer 3 + exact sigmoid (exp rides the EUP slot; it is far from saturated)
    h3 = jnp.dot(h2.astype(jnp.bfloat16), w3_ref[...],
                 preferred_element_type=jnp.float32)
    h3 = h3 + b3_ref[...]
    o_ref[...] = jax.nn.sigmoid(h3).astype(o_ref.dtype)


def qnet_forward(x, params, *, batch_tile=4096):
    """Run the fused MLP kernel.

    x: (B, input_size) float32.  The batch is tiled into TB-row blocks
    (TB a multiple of 8, capped at `batch_tile` and also capped so large
    batches produce >=4 grid steps for v7x megacore sharding).  Weights and
    biases are pinned VMEM-resident across the whole grid.
    """
    w1, b1, w2, b2, w3, b3 = params
    B, in_size = x.shape
    out_size = w3.shape[1]

    # Matmul inputs in bf16; biases / elementwise stay f32 (f32 accumulation
    # comes from preferred_element_type inside the kernel).
    x = x.astype(jnp.bfloat16)
    w1 = w1.astype(jnp.bfloat16)
    w2 = w2.astype(jnp.bfloat16)
    w3 = w3.astype(jnp.bfloat16)

    # Batch tile: big enough to amortize the ~0.35 us per-grid-step overhead,
    # but capped so large batches still give >=4 grid steps (feeds both v7x
    # TensorCores through the "parallel" batch axis).  Always a multiple of 8.
    tb_cap = _round_up(max(batch_tile, 8), 8)
    tb = min(tb_cap, _round_up(pl.cdiv(max(B, 1), 4), 8))
    tb = max(tb, 8)
    b_pad = _round_up(B, tb)
    if b_pad != B:
        x = jnp.pad(x, ((0, b_pad - B), (0, 0)))

    grid = (b_pad // tb,)

    # Weights/biases: full-array blocks, same block index every grid step ->
    # fetched once, VMEM-resident.
    resident = lambda a: pl.BlockSpec(a.shape, lambda i: (0, 0))

    out = pl.pallas_call(
        qnet_kernel,
        out_shape=jax.ShapeDtypeStruct((b_pad, out_size), jnp.float32),
        grid=grid,
        in_specs=[
            pl.BlockSpec((tb, in_size), lambda i: (i, 0)),   # x: batch-tiled
            resident(w1), resident(b1),
            resident(w2), resident(b2),
            resident(w3), resident(b3),
        ],
        out_specs=pl.BlockSpec((tb, out_size), lambda i: (i, 0)),
        compiler_params=pltpu.CompilerParams(
            dimension_semantics=("parallel",)),  # v7x: split batch across TCs
    )(x, w1, b1, w2, b2, w3, b3)
    return out[:B]


def init_params(key, input_size, hidden_size, output_size):
    """Deterministic init mimicking PyTorch nn.Linear default (U(-k, k), k=1/sqrt(fan_in))."""
    def linear_init(k, fan_in, fan_out):
        kw, kb = jax.random.split(k)
        bound = 1.0 / jnp.sqrt(fan_in)
        w = jax.random.uniform(kw, (fan_in, fan_out), jnp.float32, -bound, bound)
        b = jax.random.uniform(kb, (1, fan_out), jnp.float32, -bound, bound)
        return w, b

    k1, k2, k3 = jax.random.split(key, 3)
    w1, b1 = linear_init(k1, input_size, hidden_size)
    w2, b2 = linear_init(k2, hidden_size, hidden_size)
    w3, b3 = linear_init(k3, hidden_size, output_size)
    return (w1, b1, w2, b2, w3, b3)


def qnet_reference_bf16(x, params):
    """Pure-JAX reference matching the kernel's numerics (bf16 matmul inputs, f32 accum)."""
    w1, b1, w2, b2, w3, b3 = params
    bf = jnp.bfloat16
    h = jnp.dot(x.astype(bf), w1.astype(bf), preferred_element_type=jnp.float32) + b1
    h = jnp.maximum(h, 0.0)
    h = jnp.dot(h.astype(bf), w2.astype(bf), preferred_element_type=jnp.float32) + b2
    h = jnp.maximum(h, 0.0)
    h = jnp.dot(h.astype(bf), w3.astype(bf), preferred_element_type=jnp.float32) + b3
    return jax.nn.sigmoid(h)


def qnet_reference_f32(x, params):
    """Full-precision pure-JAX reference (PyTorch forward semantics)."""
    w1, b1, w2, b2, w3, b3 = params
    h = jnp.maximum(x @ w1 + b1, 0.0)
    h = jnp.maximum(h @ w2 + b2, 0.0)
    return jax.nn.sigmoid(h @ w3 + b3)


if __name__ == "__main__":
    # Typical snake-game Q-net sizes: 11 state features, 32 hidden, 3 actions.
    input_size, hidden_size, output_size = 11, 32, 3

    key = jax.random.PRNGKey(0)
    kx1, kx2, kp = jax.random.split(key, 3)
    params = init_params(kp, input_size, hidden_size, output_size)

    # Case 1: tiny inference-style batch (single grid step).
    x_small = jax.random.normal(kx1, (8, input_size), dtype=jnp.float32)
    out_small = jax.block_until_ready(qnet_forward(x_small, params))
    assert out_small.shape == (8, output_size)
    assert jnp.allclose(out_small, qnet_reference_bf16(x_small, params),
                        atol=2e-3, rtol=2e-3), "small-batch mismatch vs bf16 reference"
    assert jnp.allclose(out_small, qnet_reference_f32(x_small, params),
                        atol=1e-2), "small-batch mismatch vs f32 reference"

    # Case 2: larger ragged batch with a small tile cap -> exercises multi-step
    # grid (>=4 steps), resident weights, and batch padding.
    x_big = jax.random.normal(kx2, (200, input_size), dtype=jnp.float32)
    out_big = jax.block_until_ready(qnet_forward(x_big, params, batch_tile=64))
    assert out_big.shape == (200, output_size)
    assert jnp.allclose(out_big, qnet_reference_bf16(x_big, params),
                        atol=2e-3, rtol=2e-3), "large-batch mismatch vs bf16 reference"
    assert jnp.allclose(out_big, qnet_reference_f32(x_big, params),
                        atol=1e-2), "large-batch mismatch vs f32 reference"

    print("KERNEL_OK")
</pallas_src>

<mosaic_0001>
module attributes {stable_mosaic.version = 11 : i64} {
  func.func @qnet_kernel(%arg0: i32, %arg1: memref<8x11xbf16, #tpu.memory_space<vmem>>, %arg2: memref<11x32xbf16, #tpu.memory_space<vmem>>, %arg3: memref<1x32xf32, #tpu.memory_space<vmem>>, %arg4: memref<32x32xbf16, #tpu.memory_space<vmem>>, %arg5: memref<1x32xf32, #tpu.memory_space<vmem>>, %arg6: memref<32x3xbf16, #tpu.memory_space<vmem>>, %arg7: memref<1x3xf32, #tpu.memory_space<vmem>>, %arg8: memref<8x3xf32, #tpu.memory_space<vmem>>) attributes {dimension_semantics = [#tpu.dimension_semantics<parallel>], iteration_bounds = array<i64: 1>, scalar_prefetch = 0 : i64, scratch_operands = 0 : i64, tpu.core_type = #tpu.core_type<tc>, window_params = [{transform_indices = @transform_0, window_bounds = array<i64: 8, 11>}, {pipeline_mode = #tpu.pipeline_mode<synchronous>, transform_indices = @transform_1, window_bounds = array<i64: 11, 32>}, {pipeline_mode = #tpu.pipeline_mode<synchronous>, transform_indices = @transform_2, window_bounds = array<i64: 1, 32>}, {pipeline_mode = #tpu.pipeline_mode<synchronous>, transform_indices = @transform_3, window_bounds = array<i64: 32, 32>}, {pipeline_mode = #tpu.pipeline_mode<synchronous>, transform_indices = @transform_4, window_bounds = array<i64: 1, 32>}, {pipeline_mode = #tpu.pipeline_mode<synchronous>, transform_indices = @transform_5, window_bounds = array<i64: 32, 3>}, {pipeline_mode = #tpu.pipeline_mode<synchronous>, transform_indices = @transform_6, window_bounds = array<i64: 1, 3>}, {transform_indices = @transform_7, window_bounds = array<i64: 8, 3>}]} {
    %c0 = arith.constant 0 : index
    %c0_0 = arith.constant 0 : index
    %0 = vector.load %arg1[%c0, %c0_0] : memref<8x11xbf16, #tpu.memory_space<vmem>>, vector<8x11xbf16>
    %c0_1 = arith.constant 0 : index
    %c0_2 = arith.constant 0 : index
    %1 = vector.load %arg2[%c0_1, %c0_2] : memref<11x32xbf16, #tpu.memory_space<vmem>>, vector<11x32xbf16>
    %cst = arith.constant dense<0.000000e+00> : vector<8x32xf32>
    %2 = tpu.matmul %0, %1, %cst {dimension_numbers = #tpu.dot_dimension_numbers<[1], [0], [0], [1], [0, 0, 1, 1], [], []>} : vector<8x11xbf16>, vector<11x32xbf16>, vector<8x32xf32> -> vector<8x32xf32>
    %c0_3 = arith.constant 0 : index
    %c0_4 = arith.constant 0 : index
    %3 = vector.load %arg3[%c0_3, %c0_4] : memref<1x32xf32, #tpu.memory_space<vmem>>, vector<1x32xf32>
    %4 = vector.broadcast %3 : vector<1x32xf32> to vector<8x32xf32>
    %5 = arith.addf %2, %4 : vector<8x32xf32>
    %cst_5 = arith.constant 0.000000e+00 : f32
    %6 = vector.broadcast %cst_5 : f32 to vector<8x32xf32>
    %7 = arith.maximumf %5, %6 : vector<8x32xf32>
    %8 = arith.truncf %7 : vector<8x32xf32> to vector<8x32xbf16>
    %c0_6 = arith.constant 0 : index
    %c0_7 = arith.constant 0 : index
    %9 = vector.load %arg4[%c0_6, %c0_7] : memref<32x32xbf16, #tpu.memory_space<vmem>>, vector<32x32xbf16>
    %cst_8 = arith.constant dense<0.000000e+00> : vector<8x32xf32>
    %10 = tpu.matmul %8, %9, %cst_8 {dimension_numbers = #tpu.dot_dimension_numbers<[1], [0], [0], [1], [0, 0, 1, 1], [], []>} : vector<8x32xbf16>, vector<32x32xbf16>, vector<8x32xf32> -> vector<8x32xf32>
    %c0_9 = arith.constant 0 : index
    %c0_10 = arith.constant 0 : index
    %11 = vector.load %arg5[%c0_9, %c0_10] : memref<1x32xf32, #tpu.memory_space<vmem>>, vector<1x32xf32>
    %12 = vector.broadcast %11 : vector<1x32xf32> to vector<8x32xf32>
    %13 = arith.addf %10, %12 : vector<8x32xf32>
    %cst_11 = arith.constant 0.000000e+00 : f32
    %14 = vector.broadcast %cst_11 : f32 to vector<8x32xf32>
    %15 = arith.maximumf %13, %14 : vector<8x32xf32>
    %16 = arith.truncf %15 : vector<8x32xf32> to vector<8x32xbf16>
    %c0_12 = arith.constant 0 : index
    %c0_13 = arith.constant 0 : index
    %17 = vector.load %arg6[%c0_12, %c0_13] : memref<32x3xbf16, #tpu.memory_space<vmem>>, vector<32x3xbf16>
    %cst_14 = arith.constant dense<0.000000e+00> : vector<8x3xf32>
    %18 = tpu.matmul %16, %17, %cst_14 {dimension_numbers = #tpu.dot_dimension_numbers<[1], [0], [0], [1], [0, 0, 1, 1], [], []>} : vector<8x32xbf16>, vector<32x3xbf16>, vector<8x3xf32> -> vector<8x3xf32>
    %c0_15 = arith.constant 0 : index
    %c0_16 = arith.constant 0 : index
    %19 = vector.load %arg7[%c0_15, %c0_16] : memref<1x3xf32, #tpu.memory_space<vmem>>, vector<1x3xf32>
    %20 = vector.broadcast %19 : vector<1x3xf32> to vector<8x3xf32>
    %21 = arith.addf %18, %20 : vector<8x3xf32>
    %22 = arith.negf %21 : vector<8x3xf32>
    %23 = math.exp %22 : vector<8x3xf32>
    %cst_17 = arith.constant 1.000000e+00 : f32
    %24 = vector.broadcast %cst_17 : f32 to vector<8x3xf32>
    %25 = arith.addf %24, %23 : vector<8x3xf32>
    %26 = arith.divf %24, %25 : vector<8x3xf32>
    %c0_18 = arith.constant 0 : index
    %c0_19 = arith.constant 0 : index
    %27 = vector.load %arg8[%c0_18, %c0_19] : memref<8x3xf32, #tpu.memory_space<vmem>>, vector<8x3xf32>
    tpu.vector_store %arg8[%c0_18, %c0_19], %26 {strides = array<i32>} : memref<8x3xf32, #tpu.memory_space<vmem>>, vector<8x3xf32>,
    return
  }
  func.func @transform_0(%arg0: i32) -> (i32, i32) {
    %c0_i32 = arith.constant 0 : i32
    %c0_i32_0 = arith.constant 0 : i32
    return %arg0, %c0_i32 : i32, i32
  }
  func.func @transform_1(%arg0: i32) -> (i32, i32) {
    %c0_i32 = arith.constant 0 : i32
    %c0_i32_0 = arith.constant 0 : i32
    %c0_i32_1 = arith.constant 0 : i32
    return %c0_i32, %c0_i32_0 : i32, i32
  }
  func.func @transform_2(%arg0: i32) -> (i32, i32) {
    %c0_i32 = arith.constant 0 : i32
    %c0_i32_0 = arith.constant 0 : i32
    %c0_i32_1 = arith.constant 0 : i32
    return %c0_i32, %c0_i32_0 : i32, i32
  }
  func.func @transform_3(%arg0: i32) -> (i32, i32) {
    %c0_i32 = arith.constant 0 : i32
    %c0_i32_0 = arith.constant 0 : i32
    %c0_i32_1 = arith.constant 0 : i32
    return %c0_i32, %c0_i32_0 : i32, i32
  }
  func.func @transform_4(%arg0: i32) -> (i32, i32) {
    %c0_i32 = arith.constant 0 : i32
    %c0_i32_0 = arith.constant 0 : i32
    %c0_i32_1 = arith.constant 0 : i32
    return %c0_i32, %c0_i32_0 : i32, i32
  }
  func.func @transform_5(%arg0: i32) -> (i32, i32) {
    %c0_i32 = arith.constant 0 : i32
    %c0_i32_0 = arith.constant 0 : i32
    %c0_i32_1 = arith.constant 0 : i32
    return %c0_i32, %c0_i32_0 : i32, i32
  }
  func.func @transform_6(%arg0: i32) -> (i32, i32) {
    %c0_i32 = arith.constant 0 : i32
    %c0_i32_0 = arith.constant 0 : i32
    %c0_i32_1 = arith.constant 0 : i32
    return %c0_i32, %c0_i32_0 : i32, i32
  }
  func.func @transform_7(%arg0: i32) -> (i32, i32) {
    %c0_i32 = arith.constant 0 : i32
    %c0_i32_0 = arith.constant 0 : i32
    return %arg0, %c0_i32 : i32, i32
  }
}

</mosaic_0001>

<bundles_post_ra>
// kernel: tpu_custom_call.1
= control target key start
LH: loop header
LB: loop body
LE: loop exit
PB: predicated region body
PF: predicated region fallthrough
CT: control target
= control target key end

     0   :  { %12 = vsyncpa [#allocation3], 0  ;;  %s365_s0 = inlined_call_operand.hbm [shape: bf16[8,11], index: 0, kind: input, shape index: {}]   ;;  %s366_s1 = inlined_call_operand.hbm [shape: bf16[11,32], index: 1, kind: input, shape index: {}]   ;;  %s367_s2 = inlined_call_operand.vmem [shape: f32[1,32], index: 2, kind: input, shape index: {}]   ;;  %s368_s3 = inlined_call_operand.vmem [shape: bf16[32,32], index: 3, kind: input, shape index: {}]   ;;  %s369_s4 = inlined_call_operand.vmem [shape: f32[1,32], index: 4, kind: input, shape index: {}]   ;;  %s370_s5 = inlined_call_operand.vmem [shape: bf16[32,3], index: 5, kind: input, shape index: {}]   ;;  %s371_s6 = inlined_call_operand.vmem [shape: f32[1,3], index: 6, kind: input, shape index: {}]   ;;  %s372_s7 = inlined_call_operand.vmem [shape: f32[8,3], index: 7, kind: output, shape index: {}]  }
   0x1   :  { %s19_s26 = sshll.u32 %s365_s0, 4  ;;  %s20_s26 = int_to_ptr.hbm [resolvable:$true] %s19_s26 }
   0x2   :  { %13 = vsyncpa [#allocation5], 0  ;;  %s290_s27 = smov [#allocation2]   ;;  %s29_s8 = sshll.u32 %s366_s1, 4  ;;  %s30_s8 = int_to_ptr.hbm [resolvable:$true] %s29_s8 }
   0x3   :  { %s21_s28 = sshll.u32 %s290_s27, 4  ;;  %s291_s9 = smov [#allocation4]   ;;  %s22_s28 = int_to_ptr.vmem [resolvable:$true] %s21_s28 }
   0x4   :  { %24 = dma.hbm_to_vmem [thread:$0]  %s20_s26, 64, %s22_s28, [#allocation3]  }
   0x5   :  { %s31_s10 = sshll.u32 %s291_s9, 4  ;;  %s292_s11 = smov 64   ;;  %s32_s10 = int_to_ptr.vmem [resolvable:$true] %s31_s10 }
   0x6   :  { %s293_s12 = smov 4  }
   0x7   :  { %37 = dma.hbm_to_vmem [thread:$0]  %s30_s8, 128, %s32_s10, [#allocation5], %s292_s11, %s292_s11, %s293_s12  }
   0x8   :  { %286 = dma.done.wait [#allocation3], 64  }
   0x9   :  { %287 = vsyncadd [#allocation3], 4294967232 }
   0xa   :  { %288 = dma.done.wait [#allocation5], 128  }
   0xb   :  { %289 = vsyncadd [#allocation5], 4294967168  ;;  %vm73_vm0 = vcmask 1044480   ;;  %vm74_vm1 = vcmask 1045504   ;;  %v294_v0 = vmov 65535   ;;  %vm69_vm2 = vcmask 89088  }
   0xc   :  { %v75_v1 = vsel %vm73_vm0, 4294967295, %v294_v0  ;;  %v199_v2 = vld [vmem:[#allocation4] sm:$0xf]  ;;  %v221_v3 = vld [vmem:[#allocation4] sm:$0x30]  ;;  %vm115_vm3 = vcmask 261120  }
   0xd   :  { %v76_v4 = vsel %vm74_vm1, %v75_v1, 0  ;;  %v200_v5 = vor.u32 %v221_v3, %v199_v2  ;;  %v57_v7 = vld [vmem:[#allocation2] sm:$0xf]  ;;  %v223_v8 = vld [vmem:[%s368_s3 + $0x8] sm:$0xff]  ;;  %vm189_vm7 = vcmask 23552  }
   0xe   :  { %125 = vmatpush.bf16.msra.mxu1 %v223_v8  ;;  %v222_v9 = vld [vmem:[%s368_s3] sm:$0xff]  ;;  %v225_v16 = vld [vmem:[%s370_s5 + $0x8] sm:$0xff] }
   0xf   :  { %v78_v6 = vand.u32 %v200_v5, %v76_v4  ;;  %v231_v10 = vld [vmem:[%s367_s2] ss:$0 sm:$0xff]  ;;  %163 = vmatpush.bf16.msra.mxu2 %v225_v16 }
  0x10   :  { %v224_v17 = vld [vmem:[%s370_s5] sm:$0xff] }
  0x11   :  { %87 = vmatpush.bf16.msra.mxu0 %v78_v6  ;;  %v232_v18 = vld [vmem:[%s369_s4] ss:$0 sm:$0xff] }
  0x12   :  { %126 = vmatpush.bf16.msra.mxu1 %v222_v9  ;;  %v233_v24 = vld [vmem:[%s371_s6] ss:$0 sm:$0xff] }
  0x13   :  { %164 = vmatpush.bf16.msra.mxu2 %v224_v17 }
  0x14   :  { %201 = vmatmul.msk.bf16.vlgmr.msra.gmra.mxu0 %vm69_vm2, %v57_v7 }
  0x91   :  { %v89_v11 = vpop.f32.mrf.mxu0 }
  0x92   :  { %v90_v12 = vadd.f32 %v231_v10, %v89_v11 }
  0x94   :  { %v93_v13 = vmax.f32 %v90_v12, 0.0 }
  0x96   :  { %v94_v14 = vpack.c.bf16 %v93_v13, %v93_v13 }
  0x98   :  { %210 = vmatmul.msk.bf16.vlgmr.msra.gmra.mxu1 %vm115_vm3, %v94_v14 }
  0x99   :  { %v91_v15 = vpop.f32.mrf.mxu0 }
 0x115   :  { %v128_v19 = vpop.f32.mrf.mxu1 }
 0x116   :  { %v129_v20 = vadd.f32 %v232_v18, %v128_v19 }
 0x118   :  { %v132_v21 = vmax.f32 %v129_v20, 0.0 }
 0x11a   :  { %v133_v22 = vpack.c.bf16 %v132_v21, %v132_v21 }
 0x11c   :  { %219 = vmatmul.msk.bf16.vlgmr.msra.gmra.mxu2 %vm115_vm3, %v133_v22 }
 0x11d   :  { %v130_v23 = vpop.f32.mrf.mxu1 }
 0x19f   :  { %v166_v25 = vpop.f32.mrf.mxu2 }
 0x1a0   :  { %v167_v26 = vadd.f32 %v233_v24, %v166_v25 }
 0x1a2   :  { %v220_v27 = vmul.f32 -1.442695, %v167_v26 }
 0x1a4   :  { %234 = vpow2.f32 %v220_v27 }
 0x1a7   :  { %v168_v28 = vpop.f32.mrf.mxu2 }
 0x1aa   :  { %v235_v29 = vpop.eup %234 }
 0x1ab   :  { %v173_v30 = vadd.f32 1.0, %v235_v29 }
 0x1ad   :  { %236 = vrcp.f32 %v173_v30  ;;  %v185_v34 = vand.u32 2147483648, %v173_v30  ;;  %v183_v36 = vand.u32 2147483647, %v173_v30  ;;  %vm179_vm5 = vweird.f32 %v173_v30 }
 0x1af   :  { %v186_v38 = vor.u32 1.1754944e-38, %v185_v34  ;;  %vm184_vm8 = vcmp.eq.f32.partialorder %v183_v36, 8.507059e+37 }
 0x1b3   :  { %v237_v31 = vpop.eup %236 }
 0x1b4   :  { %v175_v32 = vmul.f32 %v237_v31, %v173_v30  ;;  %vm180_vm4 = vweird.f32 %v237_v31 }
 0x1b5   :  { %vm181_vm6 = vmor %vm179_vm5, %vm180_vm4 }
 0x1b6   :  { %v176_v33 = vsub.f32 1.0, %v175_v32 }
 0x1b8   :  { %v177_v35 = vmul.f32 %v237_v31, %v176_v33 }
 0x1ba   :  { %v178_v37 = vadd.f32 %v237_v31, %v177_v35 }
 0x1bc   :  { %v182_v39 = vsel %vm181_vm6, %v237_v31, %v178_v37 }
 0x1bd   :  { %v187_v40 = vsel %vm184_vm8, %v186_v38, %v182_v39 }
 0x1be   :  { %190 = vst.msk [vmem:[%s372_s7] sm:$0xff] %vm189_vm7, %v187_v40 }
 0x1bf   :  { %195 = vsyncpa [#allocation3], 1 }
 0x1c0   :  { %196 = vsyncpa [#allocation5], 1 }

</bundles_post_ra>
